<compile_context>
chip_gen: v7x
topology: tpu7x:2x2x1
jax: 0.10.0
libtpu: 0.0.40
codegen_flags: <defaults>
</compile_context>

<pallas_src>
import functools
from typing import NamedTuple

import jax
import jax.numpy as jnp
from jax.experimental import pallas as pl
from jax.experimental.pallas import tpu as pltpu

_SUBLANE = 8


def _round_up(n, m):
    return ((n + m - 1) // m) * m


def _cdiv(a, b):
    return (a + b - 1) // b


@functools.cache
def _tpu_config():
    """Returns (vmem_budget_bytes, feature_granularity, num_tensorcores)."""
    kind = ""
    try:
        kind = jax.devices()[0].device_kind.lower()
    except Exception:
        pass
    vmem_phys = None
    try:
        vmem_phys = int(pltpu.get_tpu_info().vmem_capacity_bytes)
    except Exception:
        pass
    if vmem_phys is None:
        vmem_phys = (64 << 20) if ("v7" in kind or "7x" in kind) else (128 << 20)
    if vmem_phys <= (64 << 20):
        # v7x-class: 64 MiB per TensorCore; leave ~12 MiB for compiler scratch.
        vmem_budget = max(vmem_phys - (12 << 20), 16 << 20)
        num_tc = 2
    else:
        # v5e/v6e-class: 128 MiB physical; keep ~24 MiB headroom.
        vmem_budget = min(vmem_phys - (24 << 20), 104 << 20)
        num_tc = 2 if ("v4" in kind or "v5p" in kind) else 1
    # MXU is 256x256 on v6e/v7x -> pad feature dims to 256; 128x128 on v5e.
    feat_gran = 256 if any(t in kind for t in ("v6", "v7", "7x")) else 128
    return int(vmem_budget), int(feat_gran), int(num_tc)


@functools.cache
def _supports_single_buffering():
    """One-time capability probe for pl.Buffered(1) on this jax install."""
    try:
        def _probe(x_ref, o_ref):
            o_ref[...] = x_ref[...] + 1.0

        f = pl.pallas_call(
            _probe,
            out_shape=jax.ShapeDtypeStruct((8, 128), jnp.float32),
            grid_spec=pltpu.PrefetchScalarGridSpec(
                num_scalar_prefetch=0,
                grid=(1,),
                in_specs=[pl.BlockSpec((8, 128), lambda i: (0, 0),
                                       pipeline_mode=pl.Buffered(1))],
                out_specs=pl.BlockSpec((8, 128), lambda i: (0, 0))),
        )
        jax.block_until_ready(f(jnp.zeros((8, 128), jnp.float32)))
        return True
    except Exception:
        return False


def _pad2(a, rows, cols):
    r, c = a.shape
    if r == rows and c == cols:
        return a
    return jnp.pad(a, ((0, rows - r), (0, cols - c)))


class PreparedMLP(NamedTuple):
    w1: jax.Array
    b1: jax.Array
    w2: jax.Array
    b2: jax.Array
    w3: jax.Array
    b3: jax.Array
    d_in: int
    d_out: int


def prepare_mlp_params(w1, b1, w2, b2, w3, b3, *, use_bf16=True):
    """One-time weight prep: pad feature dims to lane/MXU-dense multiples and
    cast to the MXU operand dtype.  Zero padding is exact (padded input cols hit
    zero weight rows; padded hidden cols stay 0 through bias+ReLU; padded output
    cols are sliced off)."""
    _, feat_gran, _ = _tpu_config()
    w1, b1, w2, b2, w3, b3 = (jnp.asarray(a) for a in (w1, b1, w2, b2, w3, b3))
    d_in, h = w1.shape
    d_out = w3.shape[1]
    dip = _round_up(d_in, feat_gran)
    hp = _round_up(h, feat_gran)
    dop = _round_up(d_out, feat_gran)
    mm_dtype = jnp.bfloat16 if use_bf16 else jnp.float32
    prep = PreparedMLP(
        w1=_pad2(w1, dip, hp).astype(mm_dtype),
        b1=_pad2(b1.reshape(1, -1), 1, hp).astype(jnp.float32),
        w2=_pad2(w2, hp, hp).astype(mm_dtype),
        b2=_pad2(b2.reshape(1, -1), 1, hp).astype(jnp.float32),
        w3=_pad2(w3, hp, dop).astype(mm_dtype),
        b3=_pad2(b3.reshape(1, -1), 1, dop).astype(jnp.float32),
        d_in=int(d_in), d_out=int(d_out))
    jax.block_until_ready((prep.w1, prep.b1, prep.w2, prep.b2, prep.w3, prep.b3))
    return prep


# --------------------------------- kernels -----------------------------------

def _mlp_kernel_resident(x_ref, w1_ref, b1_ref, w2_ref, b2_ref, w3_ref, b3_ref,
                         o_ref):
    mm_dtype = w1_ref.dtype
    # Layer 1 (f32 accumulate on MXU; bias+ReLU on VPU; bf16 cast fused in).
    h1 = jnp.dot(x_ref[...], w1_ref[...], preferred_element_type=jnp.float32)
    h1 = jnp.maximum(h1 + b1_ref[...], 0.0).astype(mm_dtype)
    # Layer 2.
    h2 = jnp.dot(h1, w2_ref[...], preferred_element_type=jnp.float32)
    h2 = jnp.maximum(h2 + b2_ref[...], 0.0).astype(mm_dtype)
    # Layer 3 (output).
    out = jnp.dot(h2, w3_ref[...], preferred_element_type=jnp.float32)
    o_ref[...] = (out + b3_ref[...]).astype(o_ref.dtype)


def _mlp_kernel_htiled(x_ref, w1_ref, b1_ref, w2_ref, b2_ref, w3_ref, b3_ref,
                       o_ref, h1_ref, acc_ref):
    """Hidden-dim tiled variant: grid (batch_tile i, hidden slab j), j innermost.
    h1 is computed once per batch tile; each j processes a column slab of W2 and
    the matching row slab of W3, accumulating into an f32 scratch."""
    mm_dtype = w1_ref.dtype
    j = pl.program_id(1)

    @pl.when(j == 0)
    def _():
        h1 = jnp.dot(x_ref[...], w1_ref[...], preferred_element_type=jnp.float32)
        h1_ref[...] = jnp.maximum(h1 + b1_ref[...], 0.0).astype(h1_ref.dtype)
        acc_ref[...] = jnp.zeros_like(acc_ref)

    h2 = jnp.dot(h1_ref[...], w2_ref[...], preferred_element_type=jnp.float32)
    h2 = jnp.maximum(h2 + b2_ref[...], 0.0).astype(mm_dtype)
    acc_ref[...] += jnp.dot(h2, w3_ref[...], preferred_element_type=jnp.float32)

    @pl.when(j == pl.num_programs(1) - 1)
    def _():
        o_ref[...] = (acc_ref[...] + b3_ref[...]).astype(o_ref.dtype)


# ------------------------------ forward wrapper -------------------------------

def _make_plan(B, dip, hp, dop, mm_bytes, out_bytes, block_b, h_block,
               single_buf):
    vmem_cap, feat_gran, num_tc = _tpu_config()
    wbuf = 1 if single_buf else 2
    row_gran = _SUBLANE if mm_bytes >= 4 else 16   # native sublane tile rows
    block_b = max(int(block_b), row_gran)

    # Small-VMEM chips (v7x-class): shrink batch tile for large hidden sizes so
    # f32 intermediates + resident weights fit.
    if vmem_cap <= (56 << 20) and hp >= 2048:
        block_b = min(block_b, 256)

    # Batch tiling with minimal padding; balanced even grid on 2-TC chips.
    n_i = max(1, _cdiv(B, block_b))
    if num_tc > 1 and B >= num_tc * row_gran:
        n_i = _round_up(max(n_i, num_tc), num_tc)
    bb = _round_up(_cdiv(B, n_i), row_gran)

    w_elems = dip * hp + hp * hp + hp * dop
    b_elems = 2 * hp + dop

    def resident_bytes():
        return (w_elems * mm_bytes * wbuf + b_elems * 4 * wbuf
                + 2 * bb * dip * mm_bytes          # x (double-buffered)
                + 2 * bb * dop * out_bytes         # out (double-buffered)
                + 2 * bb * hp * 4                  # f32 h1/h2 intermediates
                + bb * hp * mm_bytes)              # cast copy

    def tiled_bytes(c):
        return (dip * hp * mm_bytes * wbuf + (hp + dop) * 4 * wbuf    # W1,b1,b3
                + 2 * (hp * c + c * dop) * mm_bytes + 2 * c * 4       # W2/W3/b2 slabs
                + 2 * bb * dip * mm_bytes + 2 * bb * dop * out_bytes  # x / out
                + bb * hp * mm_bytes + bb * dop * 4                   # h1 / acc scratch
                + 2 * bb * c * 4)                                     # f32 h2 slab

    hj = None
    if h_block is None and resident_bytes() <= 0.85 * vmem_cap:
        needed = resident_bytes()
    else:
        if h_block is not None:
            hj = max(feat_gran, min(_round_up(int(h_block), feat_gran), hp))
            while hp % hj != 0:          # feat_gran always divides hp -> terminates
                hj -= feat_gran
        else:
            hj = feat_gran
            for c in range(feat_gran, hp + 1, feat_gran):
                if hp % c == 0 and tiled_bytes(c) <= 0.85 * vmem_cap:
                    hj = c
        needed = tiled_bytes(hj)

    n_j = 1 if hj is None else hp // hj
    vmem_limit = int(min(vmem_cap, max(32 << 20, int(1.5 * needed))))
    return bb, n_i, hj, n_j, vmem_limit


@functools.partial(jax.jit, static_argnames=("d_out", "bb", "n_i", "hj", "n_j",
                                             "single_buf", "vmem_limit"))
def _mlp_forward_padded(x, w1, b1, w2, b2, w3, b3, *, d_out, bb, n_i, hj, n_j,
                        single_buf, vmem_limit):
    B = x.shape[0]
    dip, hp = w1.shape
    dop = w3.shape[1]
    mm_dtype = w1.dtype
    out_dtype = x.dtype
    Bp = bb * n_i

    xp = x
    if xp.shape[0] != Bp or xp.shape[1] != dip:
        xp = jnp.pad(xp, ((0, Bp - B), (0, dip - xp.shape[1])))
    xp = xp.astype(mm_dtype)

    if hj is None:
        # Whole weight set resident in VMEM; grid over batch only.
        kernel = _mlp_kernel_resident
        grid = (n_i,)
        dims = ("parallel",)

        def cmap(shape):
            if single_buf:
                return pl.BlockSpec(shape, lambda i: (0, 0),
                                    pipeline_mode=pl.Buffered(1))
            return pl.BlockSpec(shape, lambda i: (0, 0))

        in_specs = [pl.BlockSpec((bb, dip), lambda i: (i, 0)),
                    cmap((dip, hp)), cmap((1, hp)),
                    cmap((hp, hp)), cmap((1, hp)),
                    cmap((hp, dop)), cmap((1, dop))]
        out_specs = pl.BlockSpec((bb, dop), lambda i: (i, 0))
        scratch = []
    else:
        # Hidden-dim tiling of W2 (columns) / W3 (rows); inner reduction axis.
        kernel = _mlp_kernel_htiled
        grid = (n_i, n_j)
        dims = ("parallel", "arbitrary")

        def cmap(shape):
            if single_buf:
                return pl.BlockSpec(shape, lambda i, j: (0, 0),
                                    pipeline_mode=pl.Buffered(1))
            return pl.BlockSpec(shape, lambda i, j: (0, 0))

        in_specs = [pl.BlockSpec((bb, dip), lambda i, j: (i, 0)),   # x
                    cmap((dip, hp)),                                # W1 (resident)
                    cmap((1, hp)),                                  # b1
                    pl.BlockSpec((hp, hj), lambda i, j: (0, j)),    # W2 col slab
                    pl.BlockSpec((1, hj), lambda i, j: (0, j)),     # b2 slab
                    pl.BlockSpec((hj, dop), lambda i, j: (j, 0)),   # W3 row slab
                    cmap((1, dop))]                                 # b3
        out_specs = pl.BlockSpec((bb, dop), lambda i, j: (i, 0))
        scratch = [pltpu.VMEM((bb, hp), mm_dtype),        # h1
                   pltpu.VMEM((bb, dop), jnp.float32)]    # output accumulator

    w_elems = dip * hp + hp * hp + hp * dop
    mm_bytes = jnp.dtype(mm_dtype).itemsize
    cost = pl.CostEstimate(
        flops=int(2 * Bp * w_elems),
        transcendentals=0,
        bytes_accessed=int(Bp * dip * mm_bytes + w_elems * mm_bytes
                           + (2 * hp + dop) * 4
                           + Bp * dop * jnp.dtype(out_dtype).itemsize))

    out_padded = pl.pallas_call(
        kernel,
        out_shape=jax.ShapeDtypeStruct((Bp, dop), out_dtype),
        grid_spec=pltpu.PrefetchScalarGridSpec(
            num_scalar_prefetch=0,
            grid=grid,
            in_specs=in_specs,
            out_specs=out_specs,
            scratch_shapes=scratch),
        compiler_params=pltpu.CompilerParams(
            dimension_semantics=dims,
            vmem_limit_bytes=int(vmem_limit)),
        cost_estimate=cost,
    )(xp, w1, b1, w2, b2, w3, b3)

    return out_padded[:B, :d_out]


def mlp_forward(x, prepared: PreparedMLP, *, block_b=512, h_block=None):
    """Fused MLP forward.  `prepared` comes from prepare_mlp_params (weights are
    padded/cast once, not per call).  block_b: requested batch rows per grid
    step.  h_block: force hidden-dim tiling with this slab width (None = auto)."""
    w1, b1, w2, b2, w3, b3, d_in, d_out = prepared
    assert x.ndim == 2 and x.shape[1] == d_in, "x must be [batch, input_dim]"
    B = x.shape[0]
    dip, hp = w1.shape
    dop = w3.shape[1]
    mm_bytes = jnp.dtype(w1.dtype).itemsize
    out_bytes = jnp.dtype(x.dtype).itemsize
    single_buf = _supports_single_buffering()
    bb, n_i, hj, n_j, vmem_limit = _make_plan(
        B, dip, hp, dop, mm_bytes, out_bytes, block_b, h_block, single_buf)
    return _mlp_forward_padded(x, w1, b1, w2, b2, w3, b3,
                               d_out=d_out, bb=bb, n_i=n_i, hj=hj, n_j=n_j,
                               single_buf=single_buf, vmem_limit=vmem_limit)


# ----------------------------- reference / demo ------------------------------

def xavier_normal(key, fan_in, fan_out, dtype=jnp.float32):
    # torch.nn.init.xavier_normal_: std = sqrt(2 / (fan_in + fan_out))
    std = (2.0 / (fan_in + fan_out)) ** 0.5
    return std * jax.random.normal(key, (fan_in, fan_out), dtype=dtype)


def init_mlp_params(key, input_dim, hidden_size, output_dim):
    k1, k2, k3, kb1, kb2, kb3 = jax.random.split(key, 6)
    w1 = xavier_normal(k1, input_dim, hidden_size)
    w2 = xavier_normal(k2, hidden_size, hidden_size)
    w3 = xavier_normal(k3, hidden_size, output_dim)
    # nn.Linear default bias init: U(-1/sqrt(fan_in), 1/sqrt(fan_in))
    b1 = jax.random.uniform(kb1, (1, hidden_size), minval=-1.0, maxval=1.0) / (input_dim ** 0.5)
    b2 = jax.random.uniform(kb2, (1, hidden_size), minval=-1.0, maxval=1.0) / (hidden_size ** 0.5)
    b3 = jax.random.uniform(kb3, (1, output_dim), minval=-1.0, maxval=1.0) / (hidden_size ** 0.5)
    return w1, b1, w2, b2, w3, b3


def mlp_reference(x, w1, b1, w2, b2, w3, b3):
    h1 = jnp.maximum(x @ w1 + b1, 0.0)
    h2 = jnp.maximum(h1 @ w2 + b2, 0.0)
    return h2 @ w3 + b3


if __name__ == "__main__":
    key = jax.random.PRNGKey(0)
    kx, kp, kx2, kp2 = jax.random.split(key, 4)

    # ---- Case 1: small MLP, whole-weight-resident path ----------------------
    batch, d_in, hidden, d_out = 64, 32, 64, 16
    x = jax.random.normal(kx, (batch, d_in), dtype=jnp.float32)
    raw = init_mlp_params(kp, d_in, hidden, d_out)
    ref = mlp_reference(x, *raw)

    prep_f32 = prepare_mlp_params(*raw, use_bf16=False)
    out_f32 = jax.block_until_ready(mlp_forward(x, prep_f32, block_b=32))
    assert out_f32.shape == (batch, d_out)
    assert jnp.allclose(out_f32, ref, atol=1e-3, rtol=1e-3), "f32 resident kernel mismatch"

    prep_bf16 = prepare_mlp_params(*raw, use_bf16=True)
    out_bf16 = jax.block_until_ready(mlp_forward(x, prep_bf16, block_b=32))
    assert out_bf16.shape == (batch, d_out)
    assert jnp.allclose(out_bf16, ref, atol=5e-2, rtol=5e-2), "bf16 resident kernel mismatch"

    # ---- Case 2: larger hidden, forced hidden-dim tiling of W2/W3 -----------
    batch2, hidden2 = 48, 512
    x2 = jax.random.normal(kx2, (batch2, d_in), dtype=jnp.float32)
    raw2 = init_mlp_params(kp2, d_in, hidden2, d_out)
    ref2 = mlp_reference(x2, *raw2)

    prep2_f32 = prepare_mlp_params(*raw2, use_bf16=False)
    out2_f32 = jax.block_until_ready(
        mlp_forward(x2, prep2_f32, block_b=64, h_block=128))
    assert out2_f32.shape == (batch2, d_out)
    assert jnp.allclose(out2_f32, ref2, atol=1e-3, rtol=1e-3), "f32 h-tiled kernel mismatch"

    prep2_bf16 = prepare_mlp_params(*raw2, use_bf16=True)
    out2_bf16 = jax.block_until_ready(
        mlp_forward(x2, prep2_bf16, block_b=64, h_block=128))
    assert out2_bf16.shape == (batch2, d_out)
    assert jnp.allclose(out2_bf16, ref2, atol=7e-2, rtol=7e-2), "bf16 h-tiled kernel mismatch"

    print("KERNEL_OK")
</pallas_src>

<mosaic_0001>
module attributes {stable_mosaic.version = 11 : i64} {
  func.func @_probe(%arg0: i32, %arg1: memref<8x128xf32, #tpu.memory_space<vmem>>, %arg2: memref<8x128xf32, #tpu.memory_space<vmem>>) attributes {dimension_semantics = [#tpu.dimension_semantics<arbitrary>], iteration_bounds = array<i64: 1>, scalar_prefetch = 0 : i64, scratch_operands = 0 : i64, tpu.core_type = #tpu.core_type<tc>, window_params = [{pipeline_mode = #tpu.pipeline_mode<synchronous>, transform_indices = @transform_0, window_bounds = array<i64: 8, 128>}, {pipeline_mode = #tpu.pipeline_mode<synchronous>, transform_indices = @transform_1, window_bounds = array<i64: 8, 128>}]} {
    %c0 = arith.constant 0 : index
    %c0_0 = arith.constant 0 : index
    %0 = vector.load %arg1[%c0, %c0_0] : memref<8x128xf32, #tpu.memory_space<vmem>>, vector<8x128xf32>
    %cst = arith.constant 1.000000e+00 : f32
    %1 = vector.broadcast %cst : f32 to vector<8x128xf32>
    %2 = arith.addf %0, %1 : vector<8x128xf32>
    %c0_1 = arith.constant 0 : index
    %c0_2 = arith.constant 0 : index
    %3 = vector.load %arg2[%c0_1, %c0_2] : memref<8x128xf32, #tpu.memory_space<vmem>>, vector<8x128xf32>
    tpu.vector_store %arg2[%c0_1, %c0_2], %2 {strides = array<i32>} : memref<8x128xf32, #tpu.memory_space<vmem>>, vector<8x128xf32>,
    return
  }
  func.func @transform_0(%arg0: i32) -> (i32, i32) {
    %c0_i32 = arith.constant 0 : i32
    %c0_i32_0 = arith.constant 0 : i32
    %c0_i32_1 = arith.constant 0 : i32
    return %c0_i32, %c0_i32_0 : i32, i32
  }
  func.func @transform_1(%arg0: i32) -> (i32, i32) {
    %c0_i32 = arith.constant 0 : i32
    %c0_i32_0 = arith.constant 0 : i32
    %c0_i32_1 = arith.constant 0 : i32
    return %c0_i32, %c0_i32_0 : i32, i32
  }
}

module attributes {stable_mosaic.version = 11 : i64} {
  func.func @_mlp_kernel_resident(%arg0: i32, %arg1: memref<32x128xf32, #tpu.memory_space<vmem>>, %arg2: memref<128x128xf32, #tpu.memory_space<vmem>>, %arg3: memref<1x128xf32, #tpu.memory_space<vmem>>, %arg4: memref<128x128xf32, #tpu.memory_space<vmem>>, %arg5: memref<1x128xf32, #tpu.memory_space<vmem>>, %arg6: memref<128x128xf32, #tpu.memory_space<vmem>>, %arg7: memref<1x128xf32, #tpu.memory_space<vmem>>, %arg8: memref<32x128xf32, #tpu.memory_space<vmem>>) attributes {dimension_semantics = [#tpu.dimension_semantics<parallel>], iteration_bounds = array<i64: 2>, scalar_prefetch = 0 : i64, scratch_operands = 0 : i64, tpu.core_type = #tpu.core_type<tc>, window_params = [{transform_indices = @transform_0, window_bounds = array<i64: 32, 128>}, {pipeline_mode = #tpu.pipeline_mode<synchronous>, transform_indices = @transform_1, window_bounds = array<i64: 128, 128>}, {pipeline_mode = #tpu.pipeline_mode<synchronous>, transform_indices = @transform_2, window_bounds = array<i64: 1, 128>}, {pipeline_mode = #tpu.pipeline_mode<synchronous>, transform_indices = @transform_3, window_bounds = array<i64: 128, 128>}, {pipeline_mode = #tpu.pipeline_mode<synchronous>, transform_indices = @transform_4, window_bounds = array<i64: 1, 128>}, {pipeline_mode = #tpu.pipeline_mode<synchronous>, transform_indices = @transform_5, window_bounds = array<i64: 128, 128>}, {pipeline_mode = #tpu.pipeline_mode<synchronous>, transform_indices = @transform_6, window_bounds = array<i64: 1, 128>}, {transform_indices = @transform_7, window_bounds = array<i64: 32, 128>}]} {
    %c0 = arith.constant 0 : index
    %c0_0 = arith.constant 0 : index
    %0 = vector.load %arg1[%c0, %c0_0] : memref<32x128xf32, #tpu.memory_space<vmem>>, vector<32x128xf32>
    %c0_1 = arith.constant 0 : index
    %c0_2 = arith.constant 0 : index
    %1 = vector.load %arg2[%c0_1, %c0_2] : memref<128x128xf32, #tpu.memory_space<vmem>>, vector<128x128xf32>
    %cst = arith.constant dense<0.000000e+00> : vector<32x128xf32>
    %2 = tpu.matmul %0, %1, %cst {dimension_numbers = #tpu.dot_dimension_numbers<[1], [0], [0], [1], [0, 0, 1, 1], [], []>} : vector<32x128xf32>, vector<128x128xf32>, vector<32x128xf32> -> vector<32x128xf32>
    %c0_3 = arith.constant 0 : index
    %c0_4 = arith.constant 0 : index
    %3 = vector.load %arg3[%c0_3, %c0_4] : memref<1x128xf32, #tpu.memory_space<vmem>>, vector<1x128xf32>
    %4 = vector.broadcast %3 : vector<1x128xf32> to vector<32x128xf32>
    %5 = arith.addf %2, %4 : vector<32x128xf32>
    %cst_5 = arith.constant 0.000000e+00 : f32
    %6 = vector.broadcast %cst_5 : f32 to vector<32x128xf32>
    %7 = arith.maximumf %5, %6 : vector<32x128xf32>
    %c0_6 = arith.constant 0 : index
    %c0_7 = arith.constant 0 : index
    %8 = vector.load %arg4[%c0_6, %c0_7] : memref<128x128xf32, #tpu.memory_space<vmem>>, vector<128x128xf32>
    %cst_8 = arith.constant dense<0.000000e+00> : vector<32x128xf32>
    %9 = tpu.matmul %7, %8, %cst_8 {dimension_numbers = #tpu.dot_dimension_numbers<[1], [0], [0], [1], [0, 0, 1, 1], [], []>} : vector<32x128xf32>, vector<128x128xf32>, vector<32x128xf32> -> vector<32x128xf32>
    %c0_9 = arith.constant 0 : index
    %c0_10 = arith.constant 0 : index
    %10 = vector.load %arg5[%c0_9, %c0_10] : memref<1x128xf32, #tpu.memory_space<vmem>>, vector<1x128xf32>
    %11 = vector.broadcast %10 : vector<1x128xf32> to vector<32x128xf32>
    %12 = arith.addf %9, %11 : vector<32x128xf32>
    %cst_11 = arith.constant 0.000000e+00 : f32
    %13 = vector.broadcast %cst_11 : f32 to vector<32x128xf32>
    %14 = arith.maximumf %12, %13 : vector<32x128xf32>
    %c0_12 = arith.constant 0 : index
    %c0_13 = arith.constant 0 : index
    %15 = vector.load %arg6[%c0_12, %c0_13] : memref<128x128xf32, #tpu.memory_space<vmem>>, vector<128x128xf32>
    %cst_14 = arith.constant dense<0.000000e+00> : vector<32x128xf32>
    %16 = tpu.matmul %14, %15, %cst_14 {dimension_numbers = #tpu.dot_dimension_numbers<[1], [0], [0], [1], [0, 0, 1, 1], [], []>} : vector<32x128xf32>, vector<128x128xf32>, vector<32x128xf32> -> vector<32x128xf32>
    %c0_15 = arith.constant 0 : index
    %c0_16 = arith.constant 0 : index
    %17 = vector.load %arg7[%c0_15, %c0_16] : memref<1x128xf32, #tpu.memory_space<vmem>>, vector<1x128xf32>
    %18 = vector.broadcast %17 : vector<1x128xf32> to vector<32x128xf32>
    %19 = arith.addf %16, %18 : vector<32x128xf32>
    %c0_17 = arith.constant 0 : index
    %c0_18 = arith.constant 0 : index
    %20 = vector.load %arg8[%c0_17, %c0_18] : memref<32x128xf32, #tpu.memory_space<vmem>>, vector<32x128xf32>
    tpu.vector_store %arg8[%c0_17, %c0_18], %19 {strides = array<i32>} : memref<32x128xf32, #tpu.memory_space<vmem>>, vector<32x128xf32>,
    return
  }
  func.func @transform_0(%arg0: i32) -> (i32, i32) {
    %c0_i32 = arith.constant 0 : i32
    %c0_i32_0 = arith.constant 0 : i32
    return %arg0, %c0_i32 : i32, i32
  }
  func.func @transform_1(%arg0: i32) -> (i32, i32) {
    %c0_i32 = arith.constant 0 : i32
    %c0_i32_0 = arith.constant 0 : i32
    %c0_i32_1 = arith.constant 0 : i32
    return %c0_i32, %c0_i32_0 : i32, i32
  }
  func.func @transform_2(%arg0: i32) -> (i32, i32) {
    %c0_i32 = arith.constant 0 : i32
    %c0_i32_0 = arith.constant 0 : i32
    %c0_i32_1 = arith.constant 0 : i32
    return %c0_i32, %c0_i32_0 : i32, i32
  }
  func.func @transform_3(%arg0: i32) -> (i32, i32) {
    %c0_i32 = arith.constant 0 : i32
    %c0_i32_0 = arith.constant 0 : i32
    %c0_i32_1 = arith.constant 0 : i32
    return %c0_i32, %c0_i32_0 : i32, i32
  }
  func.func @transform_4(%arg0: i32) -> (i32, i32) {
    %c0_i32 = arith.constant 0 : i32
    %c0_i32_0 = arith.constant 0 : i32
    %c0_i32_1 = arith.constant 0 : i32
    return %c0_i32, %c0_i32_0 : i32, i32
  }
  func.func @transform_5(%arg0: i32) -> (i32, i32) {
    %c0_i32 = arith.constant 0 : i32
    %c0_i32_0 = arith.constant 0 : i32
    %c0_i32_1 = arith.constant 0 : i32
    return %c0_i32, %c0_i32_0 : i32, i32
  }
  func.func @transform_6(%arg0: i32) -> (i32, i32) {
    %c0_i32 = arith.constant 0 : i32
    %c0_i32_0 = arith.constant 0 : i32
    %c0_i32_1 = arith.constant 0 : i32
    return %c0_i32, %c0_i32_0 : i32, i32
  }
  func.func @transform_7(%arg0: i32) -> (i32, i32) {
    %c0_i32 = arith.constant 0 : i32
    %c0_i32_0 = arith.constant 0 : i32
    return %arg0, %c0_i32 : i32, i32
  }
}

</mosaic_0001>

<bundles_post_ra>
// kernel: tpu_custom_call.1
= control target key start
LH: loop header
LB: loop body
LE: loop exit
PB: predicated region body
PF: predicated region fallthrough
CT: control target
= control target key end

     0   :  { %6 = vsyncpa [#allocation3], 0  ;;  %s125_s0 = inlined_call_operand.hbm [shape: f32[8,128], index: 0, kind: input, shape index: {}]   ;;  %s126_s1 = inlined_call_operand.hbm [shape: f32[8,128], index: 1, kind: output, shape index: {}]  }
   0x1   :  { %7 = vsyncpa [#allocation4], 0  ;;  %s89_s6 = smov [#allocation2]   ;;  %s41_s10 = scalar_lea.hbm %s125_s0, 128 }
   0x2   :  { %s14_s7 = sshll.u32 %s89_s6, 4  ;;  %p42_p0 = scmp.ne.s32.totalorder %s125_s0, %s41_s10  ;;  %s15_s7 = int_to_ptr.vmem [resolvable:$true] %s14_s7 }
   0x3   :  { %p45_p1 = scmp.lt.u32.totalorder %s41_s10, %s125_s0 }
   0x5   :  { %p47_p2 = pnand %p45_p1, %p42_p0 }
   0x7   :  { %50 = shalt.err (!%p47_p2)
}
   0x8   :  { %s51_s15 = scalar_lea.vmem %s15_s7, 128  ;;  %p56_p4 = scmp.lt.s32.totalorder %s15_s7, %s15_s7 }
   0x9   :  { %p52_p3 = scmp.ne.s32.totalorder %s15_s7, %s51_s15  ;;  %p57_p5 = scmp.lt.s32.totalorder %s51_s15, %s51_s15 }
   0xb   :  { %p58_p6 = por %p57_p5, %p56_p4 }
   0xd   :  { %p59_p7 = pnand %p58_p6, %p52_p3 }
   0xf   :  { %62 = shalt.err (!%p59_p7)
}
  0x10   :  { %17 = dma.hbm_to_vmem [thread:$0]  %s125_s0, 128, %s15_s7, [#allocation3]  }
  0x11   :  { %85 = dma.done.wait [#allocation3], 128  }
  0x12   :  { %86 = vsyncadd [#allocation3], 4294967168  ;;  %s90_s18 = smov [#allocation5]   ;;  %v21_v0 = vld [vmem:[#allocation2] sm:$0xff] }
  0x13   :  { %s30_s19 = sshll.u32 %s90_s18, 4  ;;  %v22_v1 = vadd.f32 1.0, %v21_v0  ;;  %s31_s19 = int_to_ptr.vmem [resolvable:$true] %s30_s19 }
  0x14   :  { %s63_s20 = scalar_lea.vmem %s31_s19, 128  ;;  %p68_p9 = scmp.lt.s32.totalorder %s31_s19, %s31_s19 }
  0x15   :  { %23 = vst [vmem:[#allocation5] sm:$0xff] %v22_v1  ;;  %p64_p8 = scmp.ne.s32.totalorder %s31_s19, %s63_s20  ;;  %p69_p10 = scmp.lt.s32.totalorder %s63_s20, %s63_s20 }
  0x17   :  { %p70_p11 = por %p69_p10, %p68_p9 }
  0x19   :  { %p71_p12 = pnand %p70_p11, %p64_p8 }
  0x1b   :  { %74 = shalt.err (!%p71_p12)
}
  0x1c   :  { %s75_s23 = scalar_lea.hbm %s126_s1, 128 }
  0x1d   :  { %p76_p13 = scmp.ne.s32.totalorder %s126_s1, %s75_s23  ;;  %p79_p0 = scmp.lt.u32.totalorder %s75_s23, %s126_s1 }
  0x1f   :  { %p81_p1 = pnand %p79_p0, %p76_p13 }
  0x21   :  { %84 = shalt.err (!%p81_p1)
}
  0x22   :  { %33 = dma.vmem_to_hbm [thread:$0]  %s31_s19, 128, %s126_s1, [#allocation4]  }
  0x23   :  { %87 = dma.done.wait [#allocation4], 128  }
  0x24   :  { %88 = vsyncadd [#allocation4], 4294967168 }
  0x25   :  { %37 = vsyncpa [#allocation3], 1 }
  0x26   :  { %38 = vsyncpa [#allocation4], 1 }

// kernel: _mlp_forward_padded.1
= control target key start
LH: loop header
LB: loop body
LE: loop exit
PB: predicated region body
PF: predicated region fallthrough
CT: control target
= control target key end

     0   :  { %12 = vsyncpa [#allocation3], 0  ;;  %s1347_s0 = inlined_call_operand.vmem [shape: f32[64,128], index: 0, kind: input, shape index: {}]   ;;  %s1348_s1 = inlined_call_operand.vmem [shape: f32[128,128], index: 1, kind: input, shape index: {}]   ;;  %s1349_s2 = inlined_call_operand.vmem [shape: f32[1,128], index: 2, kind: input, shape index: {}]   ;;  %s1350_s3 = inlined_call_operand.hbm [shape: f32[128,128], index: 3, kind: input, shape index: {}]   ;;  %s1351_s4 = inlined_call_operand.vmem [shape: f32[1,128], index: 4, kind: input, shape index: {}]   ;;  %s1352_s5 = inlined_call_operand.hbm [shape: f32[128,128], index: 5, kind: input, shape index: {}]   ;;  %s1353_s6 = inlined_call_operand.vmem [shape: f32[1,128], index: 6, kind: input, shape index: {}]   ;;  %s1354_s7 = inlined_call_operand.vmem [shape: f32[64,128], index: 7, kind: output, shape index: {}]  }
   0x1   :  { %13 = vsyncpa [#allocation5], 0  ;;  %s1181_s24 = smov 0  }
   0x2 LB: > { %s730_s25 = sadd.s32 4294967295, %s1135_s24   ;;  %p732_p0 = scmp.ge.s32.totalorder %s1135_s24, 1  ;;  %s1135_s24 = sphi %s1181_s24, %s19_s24  }
   0x3   : > { %p202_p1 = scmp.lt.s32.totalorder %s1135_s24, 3  ;;  %s1137_s26 = smov [#allocation2]  }
   0x4   : > { %s220_s27 = sshll.u32 %s1137_s26, 4  ;;  %p1195_p3 = scmp.eq.s32.totalorder %s730_s25, 0  ;;  %s221_s27 = int_to_ptr.vmem [resolvable:$true] %s220_s27 }
   0x5   : > { %p1189_p2 = pnand %p732_p0, %p202_p1  ;;  %s1138_s30 = smov [#allocation4]  }
   0x6   : > { %s1359_s29 = scalar_select %p1195_p3, 1, 0 }
   0x7   : > { %s1358_s28 = scalar_select %p1189_p2, 1, 0 }
   0x8   : > { %p1042_p4 = pneg %p1189_p2  ;;  %s236_s8 = sshll.u32 %s1138_s30, 4  ;;  %s1207_s8 = int_to_ptr.vmem [resolvable:$true] %s236_s8 }
   0x9   : > { %s1065_s12 = scalar_lea.hbm %s1350_s3, 2048 }
   0xa   : > { %p1203_p5 = pnand %p1195_p3, %p1042_p4  ;;  %p1066_p6 = scmp.ne.s32.totalorder %s1350_s3, %s1065_s12 }
   0xb   : > { %p1072_p10 = scmp.lt.u32.totalorder %s1065_s12, %s1350_s3 }
   0xc   : > { %p1067_p7 = pneg %p1203_p5 }
   0xe   : > { %p1068_p8 = pnand %p1067_p7, %p1066_p6 }
  0x10   : > { %p1069_p9 = pneg %p1068_p8 }
  0x12   : > { %p1074_p11 = pnand %p1072_p10, %p1069_p9 }
  0x14   : > { %1077 = shalt.err (!%p1074_p11)
}
  0x15   : > { %s1078_s17 = scalar_lea.vmem %s221_s27, 2048  ;;  %p1086_p1 = scmp.lt.s32.totalorder %s221_s27, %s221_s27 }
  0x16   : > { %p1079_p12 = scmp.ne.s32.totalorder %s221_s27, %s1078_s17  ;;  %p1087_p4 = scmp.lt.s32.totalorder %s1078_s17, %s1078_s17 }
  0x18   : > { %p1081_p13 = pnand %p1079_p12, %p1067_p7  ;;  %p1088_p3 = por %p1087_p4, %p1086_p1 }
  0x1a   : > { %p1082_p0 = pneg %p1081_p13 }
  0x1c   : > { %p1089_p2 = pnand %p1088_p3, %p1082_p0 }
  0x1e   : > { %1092 = shalt.err (!%p1089_p2)
}
  0x1f   : > { %s1139_s18 = smov 128   ;;  %s1140_s19 = smov 8  }
  0x20   : > { %1045 = dma.hbm_to_vmem [thread:$0]  (!%p1203_p5), %s1350_s3, 2048, %s221_s27, [#allocation3], %s1139_s18, %s1139_s18, %s1140_s19  }
  0x21   : > { %s1093_s26 = scalar_lea.hbm %s1352_s5, 2048 }
  0x22   : > { %p1094_p6 = scmp.ne.s32.totalorder %s1352_s5, %s1093_s26  ;;  %p1100_p8 = scmp.lt.u32.totalorder %s1093_s26, %s1352_s5 }
  0x24   : > { %p1096_p2 = pnand %p1094_p6, %p1067_p7 }
  0x26   : > { %p1097_p3 = pneg %p1096_p2 }
  0x28   : > { %p1102_p9 = pnand %p1100_p8, %p1097_p3 }
  0x2a   : > { %1105 = shalt.err (!%p1102_p9)
}
  0x2b   : > { %s1106_s27 = scalar_lea.vmem %s1207_s8, 2048  ;;  %p1114_p13 = scmp.lt.s32.totalorder %s1207_s8, %s1207_s8 }
  0x2c   : > { %p1107_p10 = scmp.ne.s32.totalorder %s1207_s8, %s1106_s27  ;;  %p1115_p0 = scmp.lt.s32.totalorder %s1106_s27, %s1106_s27 }
  0x2e   : > { %p1109_p11 = pnand %p1107_p10, %p1067_p7  ;;  %p1116_p1 = por %p1115_p0, %p1114_p13 }
  0x30   : > { %p1110_p12 = pneg %p1109_p11 }
  0x32   : > { %p1117_p4 = pnand %p1116_p1, %p1110_p12 }
  0x34   : > { %1120 = shalt.err (!%p1117_p4)
}
  0x35   : > { %1048 = dma.hbm_to_vmem [thread:$0]  (!%p1203_p5), %s1352_s5, 2048, %s1207_s8, [#allocation5], %s1139_s18, %s1139_s18, %s1140_s19  }
  0x36   : > { %p1361_p6 = scmp.ne.s32.totalorder %s1358_s28, 0 }
  0x37   : > { %p1362_p2 = scmp.ne.s32.totalorder (!%p1361_p6), %s1359_s29, 0 }
  0x38   : > { %264 = sbr.rel (%p1361_p6) target bundleno = 757 (0x2f5), region = 48 }
  0x3f   : > { %1126 = dma.done.wait (%p1362_p2), [#allocation3], 2048  }
  0x40   : > { %1128 = vsyncadd (%p1362_p2), [#allocation3], 4294965248 }
  0x41   : > { %1130 = dma.done.wait (%p1362_p2), [#allocation5], 2048  }
  0x42   : > { %1132 = vsyncadd (%p1362_p2), [#allocation5], 4294965248  ;;  %s739_s9 = sshll.u32 %s730_s25, 2  ;;  %v316_v0 = vld [vmem:[%s1348_s1] sm:$0xff]  ;;  %v317_v1 = vld [vmem:[%s1348_s1 + $0x8] sm:$0xff] }
  0x43   : > { %p301_p7 = scmp.lt.s32.totalorder %s739_s9, 7  ;;  %v318_v2 = vld [vmem:[%s1348_s1 + $0x10] sm:$0xff]  ;;  %v922_v3 = vpack.c.bf16 %v317_v1, %v316_v0  ;;  %v319_v4 = vld [vmem:[%s1348_s1 + $0x18] sm:$0xff]  ;;  %v320_v6 = vld [vmem:[%s1348_s1 + $0x20] sm:$0xff] }
  0x44   : > { %v926_v5 = vpack.c.bf16 %v319_v4, %v318_v2  ;;  %v321_v7 = vld [vmem:[%s1348_s1 + $0x28] sm:$0xff]  ;;  %v322_v10 = vld [vmem:[%s1348_s1 + $0x30] sm:$0xff]  ;;  %v323_v11 = vld [vmem:[%s1348_s1 + $0x38] sm:$0xff] }
  0x45   : > { %s1364_s9 = smov (!%p301_p7, %s739_s9), 7  ;;  %923 = vmatprep.subr.bf16.mxu0 %v922_v3  ;;  %v930_v8 = vpack.c.bf16 %v321_v7, %v320_v6  ;;  %v428_v12 = vld [vmem:[#allocation2] sm:$0xff]  ;;  %v429_v13 = vld [vmem:[#allocation2 + $0x8] sm:$0xff]  ;;  %v430_v14 = vld [vmem:[#allocation2 + $0x10] sm:$0xff]  ;;  %v934_v18 = vpack.c.bf16 %v323_v11, %v322_v10 }
  0x46   : > { %s740_s28 = sshll.u32 %s1364_s9, 3  ;;  %925 = vmatpush3.bf16.msra.mxu0 %v922_v3  ;;  %v431_v15 = vld [vmem:[#allocation2 + $0x18] sm:$0xff]  ;;  %v954_v16 = vpack.c.bf16 %v429_v13, %v428_v12  ;;  %v432_v19 = vld [vmem:[#allocation2 + $0x20] sm:$0xff]  ;;  %v433_v20 = vld [vmem:[#allocation2 + $0x28] sm:$0xff] }
  0x47   : > { %s1294_s10 = scalar_lea.vmem %s1347_s0, %s740_s28  ;;  %927 = vmatprep.subr.bf16.mxu0 %v926_v5  ;;  %v958_v17 = vpack.c.bf16 %v431_v15, %v430_v14  ;;  %v324_v21 = vld [vmem:[%s1348_s1 + $0x40] sm:$0xff]  ;;  %v325_v22 = vld [vmem:[%s1348_s1 + $0x48] sm:$0xff]  ;;  %v962_v23 = vpack.c.bf16 %v433_v20, %v432_v19  ;;  %v434_v25 = vld [vmem:[#allocation2 + $0x30] sm:$0xff]  ;;  %s310_s17 = scalar_lea.vmem %s1354_s7, %s740_s28 }
  0x48   : > { %v312_v9 = vld [vmem:[%s1294_s10] sm:$0xff]  ;;  %955 = vmatprep.subr.bf16.mxu1 %v954_v16  ;;  %v938_v24 = vpack.c.bf16 %v325_v22, %v324_v21  ;;  %v435_v26 = vld [vmem:[#allocation2 + $0x38] sm:$0xff]  ;;  %v326_v27 = vld [vmem:[%s1348_s1 + $0x50] sm:$0xff] }
  0x49   : > { %840 = vmatprep.mubr.f32.mxu0 %v312_v9  ;;  %957 = vmatpush3.bf16.msra.mxu1 %v954_v16  ;;  %v327_v28 = vld [vmem:[%s1348_s1 + $0x58] sm:$0xff]  ;;  %v966_v29 = vpack.c.bf16 %v435_v26, %v434_v25  ;;  %v436_v31 = vld [vmem:[#allocation2 + $0x40] sm:$0xff]  ;;  %v437_v32 = vld [vmem:[#allocation2 + $0x48] sm:$0xff] }
  0x4a   : > { %929 = vmatpush3.bf16.msra.mxu0 %v926_v5  ;;  %959 = vmatprep.subr.bf16.mxu1 %v958_v17  ;;  %v942_v30 = vpack.c.bf16 %v327_v28, %v326_v27  ;;  %v328_v33 = vld [vmem:[%s1348_s1 + $0x60] sm:$0xff]  ;;  %v329_v34 = vld [vmem:[%s1348_s1 + $0x68] sm:$0xff]  ;;  %v970_v35 = vpack.c.bf16 %v437_v32, %v436_v31  ;;  %v438_v37 = vld [vmem:[#allocation2 + $0x50] sm:$0xff] }
  0x4b   : > { %931 = vmatprep.subr.bf16.mxu0 %v930_v8  ;;  %v946_v36 = vpack.c.bf16 %v329_v34, %v328_v33  ;;  %v439_v38 = vld [vmem:[#allocation2 + $0x58] sm:$0xff]  ;;  %v330_v39 = vld [vmem:[%s1348_s1 + $0x70] sm:$0xff]  ;;  %v440_v43 = vld [vmem:[#allocation2 + $0x60] sm:$0xff] }
  0x4c   : > { %v331_v40 = vld [vmem:[%s1348_s1 + $0x78] sm:$0xff]  ;;  %v974_v41 = vpack.c.bf16 %v439_v38, %v438_v37  ;;  %v441_v44 = vld [vmem:[#allocation2 + $0x68] sm:$0xff]  ;;  %v314_v47 = vld [vmem:[%s1294_s10 + $0x10] sm:$0xff] }
  0x4d   : > { %961 = vmatpush3.bf16.msra.mxu1 %v958_v17  ;;  %v950_v42 = vpack.c.bf16 %v331_v40, %v330_v39  ;;  %v978_v45 = vpack.c.bf16 %v441_v44, %v440_v43  ;;  %v313_v46 = vld [vmem:[%s1294_s10 + $0x8] sm:$0xff]  ;;  %v315_v48 = vld [vmem:[%s1294_s10 + $0x18] sm:$0xff]  ;;  %v442_v49 = vld [vmem:[#allocation2 + $0x70] sm:$0xff] }
  0x4e   : > { %933 = vmatpush3.bf16.msra.mxu0 %v930_v8  ;;  %963 = vmatprep.subr.bf16.mxu1 %v962_v23  ;;  %v443_v50 = vld [vmem:[#allocation2 + $0x78] sm:$0xff]  ;;  %v540_v52 = vld [vmem:[#allocation4] sm:$0xff]  ;;  %v541_v53 = vld [vmem:[#allocation4 + $0x8] sm:$0xff] }
  0x4f   : > { %935 = vmatprep.subr.bf16.mxu0 %v934_v18  ;;  %v982_v51 = vpack.c.bf16 %v443_v50, %v442_v49  ;;  %v542_v54 = vld [vmem:[#allocation4 + $0x10] sm:$0xff]  ;;  %v986_v55 = vpack.c.bf16 %v541_v53, %v540_v52  ;;  %v543_v56 = vld [vmem:[#allocation4 + $0x18] sm:$0xff]  ;;  %v544_v58 = vld [vmem:[#allocation4 + $0x20] sm:$0xff] }
  0x50   : > { %v990_v57 = vpack.c.bf16 %v543_v56, %v542_v54  ;;  %v545_v59 = vld [vmem:[#allocation4 + $0x28] sm:$0xff]  ;;  %v546_v61 = vld [vmem:[#allocation4 + $0x30] sm:$0xff]  ;;  %v547_v62 = vld [vmem:[#allocation4 + $0x38] sm:$0xff] }
  0x51   : > { %965 = vmatpush3.bf16.msra.mxu1 %v962_v23  ;;  %v994_v60 = vpack.c.bf16 %v545_v59, %v544_v58  ;;  %v998_v63 = vpack.c.bf16 %v547_v62, %v546_v61  ;;  %v548_v0 = vld [vmem:[#allocation4 + $0x40] sm:$0xff]  ;;  %v549_v1 = vld [vmem:[#allocation4 + $0x48] sm:$0xff]  ;;  %v550_v3 = vld [vmem:[#allocation4 + $0x50] sm:$0xff] }
  0x52   : > { %937 = vmatpush3.bf16.msra.mxu0 %v934_v18  ;;  %967 = vmatprep.subr.bf16.mxu1 %v966_v29  ;;  %v1002_v2 = vpack.c.bf16 %v549_v1, %v548_v0  ;;  %v551_v4 = vld [vmem:[#allocation4 + $0x58] sm:$0xff]  ;;  %v552_v6 = vld [vmem:[#allocation4 + $0x60] sm:$0xff]  ;;  %v553_v7 = vld [vmem:[#allocation4 + $0x68] sm:$0xff] }
  0x53   : > { %939 = vmatprep.subr.bf16.mxu0 %v938_v24  ;;  %v1006_v5 = vpack.c.bf16 %v551_v4, %v550_v3  ;;  %v1010_v8 = vpack.c.bf16 %v553_v7, %v552_v6  ;;  %v743_v9 = vld [vmem:[%s1349_s2] ss:$0 sm:$0xff]  ;;  %v554_v22 = vld [vmem:[#allocation4 + $0x70] sm:$0xff]  ;;  %v555_v23 = vld [vmem:[#allocation4 + $0x78] sm:$0xff] }
  0x54   : > { %v744_v25 = vld [vmem:[%s1351_s4] ss:$0 sm:$0xff] }
  0x55   : > { %969 = vmatpush3.bf16.msra.mxu1 %v966_v29  ;;  %v745_v38 = vld [vmem:[%s1353_s6] ss:$0 sm:$0xff] }
  0x56   : > { %941 = vmatpush3.bf16.msra.mxu0 %v938_v24  ;;  %971 = vmatprep.subr.bf16.mxu1 %v970_v35  ;;  %v1014_v24 = vpack.c.bf16 %v555_v23, %v554_v22 }
  0x57   : > { %943 = vmatprep.subr.bf16.mxu0 %v942_v30 }
  0x59   : > { %973 = vmatpush3.bf16.msra.mxu1 %v970_v35 }
  0x5a   : > { %945 = vmatpush3.bf16.msra.mxu0 %v942_v30  ;;  %975 = vmatprep.subr.bf16.mxu1 %v974_v41 }
  0x5b   : > { %947 = vmatprep.subr.bf16.mxu0 %v946_v36 }
  0x5d   : > { %977 = vmatpush3.bf16.msra.mxu1 %v974_v41 }
  0x5e   : > { %949 = vmatpush3.bf16.msra.mxu0 %v946_v36  ;;  %979 = vmatprep.subr.bf16.mxu1 %v978_v45 }
  0x5f   : > { %951 = vmatprep.subr.bf16.mxu0 %v950_v42 }
  0x61   : > { %981 = vmatpush3.bf16.msra.mxu1 %v978_v45 }
  0x62   : > { %953 = vmatpush3.bf16.msra.mxu0 %v950_v42  ;;  %983 = vmatprep.subr.bf16.mxu1 %v982_v51 }
  0x63   : > { %987 = vmatprep.subr.bf16.mxu0 %v986_v55 }
  0x65   : > { %841 = vmatmul.mubr.f32.vlgmr.msra.gmra.mrb[0].mxu0 %v313_v46  ;;  %985 = vmatpush3.bf16.msra.mxu1 %v982_v51 }
  0x66   : > { %843 = vmatprep.mubr.f32.mxu0 %v314_v47  ;;  %1018 = vmatprep.subr.bf16.mxu1 %v986_v55 }
  0x67   : > { %989 = vmatpush3.bf16.msra.mxu0 %v986_v55 }
  0x68   : > { %991 = vmatprep.subr.bf16.mxu0 %v990_v57 }
  0x69   : > { %844 = vmatmul.mubr.f32.gmra.mrb[2].mxu0 %v315_v48 }
  0x6b   : > { %993 = vmatpush3.bf16.msra.mxu0 %v990_v57 }
  0x6c   : > { %995 = vmatprep.subr.bf16.mxu0 %v994_v60 }
  0x6f   : > { %997 = vmatpush3.bf16.msra.mxu0 %v994_v60 }
  0x70   : > { %999 = vmatprep.subr.bf16.mxu0 %v998_v63 }
  0x73   : > { %1001 = vmatpush3.bf16.msra.mxu0 %v998_v63 }
  0x74   : > { %1003 = vmatprep.subr.bf16.mxu0 %v1002_v2 }
  0x77   : > { %1005 = vmatpush3.bf16.msra.mxu0 %v1002_v2 }
  0x78   : > { %1007 = vmatprep.subr.bf16.mxu0 %v1006_v5 }
  0x7b   : > { %1009 = vmatpush3.bf16.msra.mxu0 %v1006_v5 }
  0x7c   : > { %1011 = vmatprep.subr.bf16.mxu0 %v1010_v8 }
  0x7f   : > { %1013 = vmatpush3.bf16.msra.mxu0 %v1010_v8 }
  0x80   : > { %1015 = vmatprep.subr.bf16.mxu0 %v1014_v24 }
  0x83   : > { %1017 = vmatpush3.bf16.msra.mxu0 %v1014_v24 }
 0x138   : > { %v842_v10 = vpop.f32.mrb[0].mxu0 }
 0x139   : > { %v411_v11 = vadd.f32 %v842_v10, %v743_v9  ;;  %v405_v12 = vpop.f32.mrb[1].mxu0 }
 0x13a   : > { %v406_v13 = vadd.f32 %v743_v9, %v405_v12 }
 0x13b   : > { %v425_v16 = vmax.f32 %v411_v11, 0.0 }
 0x13c   : > { %v845_v14 = vpop.f32.mrb[2].mxu0  ;;  %v424_v15 = vmax.f32 %v406_v13, 0.0 }
 0x13d   : > { %v421_v17 = vadd.f32 %v845_v14, %v743_v9  ;;  %v415_v18 = vpop.f32.mrb[3].mxu0 }
 0x13e   : > { %v416_v19 = vadd.f32 %v743_v9, %v415_v18  ;;  %878 = vmatprep.mubr.f32.mxu1 %v424_v15 }
 0x13f   : > { %879 = vmatmul.mubr.f32.vlgmr.msra.gmra.mrb[0].mxu1 %v425_v16  ;;  %v427_v21 = vmax.f32 %v421_v17, 0.0 }
 0x140   : > { %v426_v20 = vmax.f32 %v416_v19, 0.0  ;;  %1026 = vmatpush3.bf16.msra.mxu1 %v986_v55 }
 0x141   : > { %1019 = vmatprep.subr.bf16.mxu1 %v990_v57 }
 0x142   : > { %881 = vmatprep.mubr.f32.mxu1 %v426_v20 }
 0x143   : > { %882 = vmatmul.mubr.f32.gmra.mrb[2].mxu1 %v427_v21 }
 0x144   : > { %1027 = vmatpush3.bf16.msra.mxu1 %v990_v57 }
 0x145   : > { %1020 = vmatprep.subr.bf16.mxu1 %v994_v60 }
 0x148   : > { %1028 = vmatpush3.bf16.msra.mxu1 %v994_v60 }
 0x149   : > { %1021 = vmatprep.subr.bf16.mxu1 %v998_v63 }
 0x14c   : > { %1029 = vmatpush3.bf16.msra.mxu1 %v998_v63 }
 0x14d   : > { %1022 = vmatprep.subr.bf16.mxu1 %v1002_v2 }
 0x150   : > { %1030 = vmatpush3.bf16.msra.mxu1 %v1002_v2 }
 0x151   : > { %1023 = vmatprep.subr.bf16.mxu1 %v1006_v5 }
 0x154   : > { %1031 = vmatpush3.bf16.msra.mxu1 %v1006_v5 }
 0x155   : > { %1024 = vmatprep.subr.bf16.mxu1 %v1010_v8 }
 0x158   : > { %1032 = vmatpush3.bf16.msra.mxu1 %v1010_v8 }
 0x159   : > { %1025 = vmatprep.subr.bf16.mxu1 %v1014_v24 }
 0x15c   : > { %1033 = vmatpush3.bf16.msra.mxu1 %v1014_v24 }
 0x212   : > { %v880_v26 = vpop.f32.mrb[0].mxu1 }
 0x213   : > { %v523_v27 = vadd.f32 %v880_v26, %v744_v25  ;;  %v517_v28 = vpop.f32.mrb[1].mxu1 }
 0x214   : > { %v518_v29 = vadd.f32 %v744_v25, %v517_v28 }
 0x215   : > { %v537_v32 = vmax.f32 %v523_v27, 0.0 }
 0x216   : > { %v536_v30 = vmax.f32 %v518_v29, 0.0  ;;  %v883_v31 = vpop.f32.mrb[2].mxu1 }
 0x217   : > { %v533_v33 = vadd.f32 %v883_v31, %v744_v25  ;;  %v527_v34 = vpop.f32.mrb[3].mxu1 }
 0x218   : > { %v528_v35 = vadd.f32 %v744_v25, %v527_v34  ;;  %916 = vmatprep.mubr.f32.mxu0 %v536_v30 }
 0x219   : > { %917 = vmatmul.mubr.f32.vlgmr.msra.gmra.mrb[4].mxu0 %v537_v32  ;;  %v539_v37 = vmax.f32 %v533_v33, 0.0 }
 0x21a   : > { %v538_v36 = vmax.f32 %v528_v35, 0.0 }
 0x21c   : > { %919 = vmatprep.mubr.f32.mxu1 %v538_v36 }
 0x21d   : > { %920 = vmatmul.mubr.f32.vlgmr.msra.gmra.mrb[4].mxu1 %v539_v37 }
 0x2ec   : > { %v918_v39 = vpop.f32.mrb[4].mxu0 }
 0x2ed   : > { %v629_v40 = vpop.f32.mrb[5].mxu0  ;;  %v635_v42 = vadd.f32 %v918_v39, %v745_v38 }
 0x2ee   : > { %v630_v41 = vadd.f32 %v745_v38, %v629_v40 }
 0x2ef   : > { %649 = vst [vmem:[%s310_s17 + $0x8] sm:$0xff] %v635_v42 }
 0x2f0   : > { %648 = vst [vmem:[%s310_s17] sm:$0xff] %v630_v41  ;;  %v921_v43 = vpop.f32.mrb[4].mxu1 }
 0x2f1   : > { %v639_v44 = vpop.f32.mrb[5].mxu1  ;;  %v645_v46 = vadd.f32 %v921_v43, %v745_v38 }
 0x2f2   : > { %v640_v45 = vadd.f32 %v745_v38, %v639_v44 }
 0x2f3   : > { %651 = vst [vmem:[%s310_s17 + $0x18] sm:$0xff] %v645_v46 }
 0x2f4   : > { %650 = vst [vmem:[%s310_s17 + $0x10] sm:$0xff] %v640_v45 }
 0x2f5 PF: > { %s19_s24 = sadd.s32 1, %s1135_s24  }
 0x2f6   : > { %p16_p5 = scmp.ge.s32.totalorder %s19_s24, 4  }
 0x2f8   :  { %18 = sbr.rel (!%p16_p5) target bundleno = 2 (0x2), region = 87 }
 0x2ff   :  { %674 = vsyncpa [#allocation3], 1 }
 0x300   :  { %676 = vsyncpa [#allocation3 + $0x1], 1 }
 0x301   :  { %677 = vsyncpa [#allocation5], 1 }

</bundles_post_ra>
